<compile_context>
chip_gen: v5e
topology: v5e:2x2
jax: 0.10.0
libtpu: 0.0.40
codegen_flags: <defaults>
</compile_context>

<pallas_src>
import jax
import jax.numpy as jnp
from jax import lax
from jax.experimental import pallas as pl
from jax.experimental.pallas import tpu as pltpu


def _final_layer_kernel(coef_ref, wt_ref, dists_ref, out_ref, acc_ref):
    # grid = (P_tiles, HW_tiles); HW is the innermost reduction axis.
    hw = pl.program_id(1)
    n_params = acc_ref.shape[0]

    @pl.when(hw == 0)
    def _():
        acc_ref[...] = jnp.zeros_like(acc_ref)

    dists = dists_ref[...]                                   # [TP, THW] f32 (resident)

    # n_params is tiny (2-4 distribution params) -> static unroll; every k
    # reuses the already-resident dists tile (single EUP pass per k).
    for k in range(n_params):
        rbf = jnp.exp(dists * coef_ref[k])                   # VPU mul + EUP exp
        wt_k = wt_ref[:, k, :]                               # [B, THW] static slice
        # sum_hw wt[b,hw] * rbf[p,hw]  -> contract last dims, no rbf.T copy.
        acc_ref[k] += lax.dot_general(
            wt_k, rbf,
            dimension_numbers=(((1,), (1,)), ((), ())),
            preferred_element_type=jnp.float32)              # [B, TP] on MXU

    @pl.when(hw == pl.num_programs(1) - 1)
    def _():
        out_ref[...] = acc_ref[...]


def _pick_tile(dim, cap, align):
    """Full dim if it fits the cap, else the largest multiple of `align`
    that divides `dim` and is <= cap; falls back to the full dim."""
    if dim <= cap:
        return dim
    t = cap - (cap % align)
    while t >= align:
        if dim % t == 0:
            return t
        t -= align
    return dim


def final_layer_forward(x, dists, init_ls, *, p_tile=None, hw_tile=None):
    """
    x        : [B, n_params, H, W]  gridded parameter predictions (NCHW)
    dists    : [P, H, W]            squared distances target-points -> grid
    init_ls  : [n_params]           per-ParamLayer length scales
    returns  : [B, P, n_params]
    """
    B, n_params, H, W = x.shape
    P = dists.shape[0]
    HW = H * W

    # Free views (H, W are trailing) — no HBM transpose of x.
    wt = x.reshape(B, n_params, HW).astype(jnp.float32)
    dists_flat = dists.reshape(P, HW).astype(jnp.float32)
    # Hoisted RBF scale: one divide per param instead of one per element.
    coef = (-0.5 / (init_ls.astype(jnp.float32) ** 2))       # [n_params]

    # Tile sizes: P-tile must be a multiple of 128 (lane-dense output) or the
    # full P; HW-tile must be a multiple of 128 or the full HW. Defaults keep
    # live VMEM blocks (dists + rbf + wt, double-buffered) well under 16 MiB,
    # which fits the scoped-VMEM budget on v5e/v6e/v7x.
    TP = p_tile if p_tile is not None else _pick_tile(P, 512, 128)
    THW = hw_tile if hw_tile is not None else _pick_tile(HW, 2048, 128)
    assert TP == P or (TP % 128 == 0 and P % TP == 0), (TP, P)
    assert THW == HW or (THW % 128 == 0 and HW % THW == 0), (THW, HW)

    grid = (P // TP, HW // THW)

    out = pl.pallas_call(
        _final_layer_kernel,
        out_shape=jax.ShapeDtypeStruct((n_params, B, P), jnp.float32),
        grid_spec=pltpu.PrefetchScalarGridSpec(
            num_scalar_prefetch=0,
            grid=grid,
            in_specs=[
                # per-param RBF coefficients, scalar-read from SMEM
                pl.BlockSpec(memory_space=pltpu.MemorySpace.SMEM),
                # wt [B, n_params, HW]: only the HW axis is tiled
                pl.BlockSpec((B, n_params, THW), lambda p, hw: (0, 0, hw)),
                # dists [P, HW]
                pl.BlockSpec((TP, THW), lambda p, hw: (p, hw)),
            ],
            # out [n_params, B, P]: block index constant across the hw axis
            out_specs=pl.BlockSpec((n_params, B, TP), lambda p, hw: (0, 0, p)),
            scratch_shapes=[pltpu.VMEM((n_params, B, TP), jnp.float32)],
        ),
        compiler_params=pltpu.CompilerParams(
            # P axis is fully independent -> megacore-shardable on v7x;
            # HW is the accumulation axis.
            dimension_semantics=("parallel", "arbitrary"),
            vmem_limit_bytes=48 * 1024 * 1024,
        ),
    )(coef, wt, dists_flat)

    # [n_params, B, P] -> [B, P, n_params]  (tiny, done in XLA)
    return jnp.transpose(out, (1, 2, 0))


def _reference(x, dists, init_ls):
    # pure-JAX reference of the ParamLayer math
    B, n_params, H, W = x.shape
    outs = []
    for k in range(n_params):
        rbf = jnp.exp(-0.5 * dists / (init_ls[k] ** 2))          # [P,H,W]
        vals = jnp.einsum('bij,pij->bpij', x[:, k], rbf)         # [B,P,H,W]
        outs.append(vals.sum((2, 3)))                            # [B,P]
    return jnp.stack(outs, axis=-1)                              # [B,P,n_params]


if __name__ == "__main__":
    key = jax.random.PRNGKey(0)
    B, n_params, H, W, P = 2, 3, 16, 16, 8
    k1, k2 = jax.random.split(key)

    x = jax.random.normal(k1, (B, n_params, H, W), dtype=jnp.float32)
    # squared distances from P off-grid target points to each grid cell
    dists = jnp.abs(jax.random.normal(k2, (P, H, W), dtype=jnp.float32)) * 2.0
    # per-ParamLayer length scales (independent learnable params in the module)
    init_ls = jnp.array([0.5, 0.75, 1.25], dtype=jnp.float32)

    # hw_tile=128 forces two HW reduction steps so the accumulator path
    # (pl.when init / writeback) is exercised even at these toy sizes.
    out = final_layer_forward(x, dists, init_ls, hw_tile=128)
    jax.block_until_ready(out)

    ref = _reference(x, dists, init_ls)
    assert out.shape == (B, P, n_params)
    assert jnp.allclose(out, ref, atol=1e-4, rtol=1e-4), float(
        jnp.max(jnp.abs(out - ref)))

    print("KERNEL_OK")
</pallas_src>

<mosaic_0001>
module attributes {stable_mosaic.version = 11 : i64} {
  func.func @_final_layer_kernel(%arg0: i32, %arg1: i32, %arg2: memref<3xf32, #tpu.memory_space<smem>>, %arg3: memref<2x3x128xf32, #tpu.memory_space<vmem>>, %arg4: memref<8x128xf32, #tpu.memory_space<vmem>>, %arg5: memref<3x2x8xf32, #tpu.memory_space<vmem>>, %arg6: memref<3x2x8xf32, #tpu.memory_space<vmem>>) attributes {dimension_semantics = [#tpu.dimension_semantics<parallel>, #tpu.dimension_semantics<arbitrary>], iteration_bounds = array<i64: 1, 2>, scalar_prefetch = 0 : i64, scratch_operands = 1 : i64, tpu.core_type = #tpu.core_type<tc>, window_params = [{transform_indices = @transform_0, window_bounds = array<i64: 3>}, {transform_indices = @transform_1, window_bounds = array<i64: 2, 3, 128>}, {transform_indices = @transform_2, window_bounds = array<i64: 8, 128>}, {transform_indices = @transform_3, window_bounds = array<i64: 3, 2, 8>}]} {
    %c0_i32 = arith.constant 0 : i32
    %0 = arith.cmpi eq, %arg1, %c0_i32 : i32
    %1 = arith.extui %0 : i1 to i32
    %c0_i32_0 = arith.constant 0 : i32
    %2 = arith.cmpi ne, %1, %c0_i32_0 : i32
    scf.if %2 {
      %cst_33 = arith.constant 0.000000e+00 : f32
      %46 = vector.broadcast %cst_33 : f32 to vector<3x2x8xf32>
      %c0_34 = arith.constant 0 : index
      %c0_35 = arith.constant 0 : index
      %c0_36 = arith.constant 0 : index
      %47 = vector.load %arg6[%c0_34, %c0_35, %c0_36] : memref<3x2x8xf32, #tpu.memory_space<vmem>>, vector<3x2x8xf32>
      tpu.vector_store %arg6[%c0_34, %c0_35, %c0_36], %46 {strides = array<i32>} : memref<3x2x8xf32, #tpu.memory_space<vmem>>, vector<3x2x8xf32>,
    } else {
    }
    %c0 = arith.constant 0 : index
    %c0_1 = arith.constant 0 : index
    %3 = vector.load %arg4[%c0, %c0_1] : memref<8x128xf32, #tpu.memory_space<vmem>>, vector<8x128xf32>
    %c0_2 = arith.constant 0 : index
    %4 = memref.load %arg2[%c0_2] : memref<3xf32, #tpu.memory_space<smem>>
    %5 = vector.broadcast %4 : f32 to vector<8x128xf32>
    %6 = arith.mulf %3, %5 : vector<8x128xf32>
    %7 = math.exp %6 : vector<8x128xf32>
    %c0_3 = arith.constant 0 : index
    %c0_4 = arith.constant 0 : index
    %c0_5 = arith.constant 0 : index
    %8 = vector.load %arg3[%c0_3, %c0_4, %c0_5] : memref<2x3x128xf32, #tpu.memory_space<vmem>>, vector<2x1x128xf32>
    %9 = vector.shape_cast %8 : vector<2x1x128xf32> to vector<2x128xf32>
    %c0_6 = arith.constant 0 : index
    %c0_7 = arith.constant 0 : index
    %c0_8 = arith.constant 0 : index
    %10 = vector.load %arg6[%c0_6, %c0_7, %c0_8] : memref<3x2x8xf32, #tpu.memory_space<vmem>>, vector<1x2x8xf32>
    %11 = vector.shape_cast %10 : vector<1x2x8xf32> to vector<2x8xf32>
    %cst = arith.constant dense<0.000000e+00> : vector<2x8xf32>
    %12 = tpu.matmul %9, %7, %cst {dimension_numbers = #tpu.dot_dimension_numbers<[1], [1], [0], [0], [0, 0, 1, 0], [], []>} : vector<2x128xf32>, vector<8x128xf32>, vector<2x8xf32> -> vector<2x8xf32>
    %13 = arith.addf %11, %12 : vector<2x8xf32>
    %c0_9 = arith.constant 0 : index
    %c0_10 = arith.constant 0 : index
    %c0_11 = arith.constant 0 : index
    %14 = vector.load %arg6[%c0_9, %c0_10, %c0_11] : memref<3x2x8xf32, #tpu.memory_space<vmem>>, vector<1x2x8xf32>
    %15 = vector.shape_cast %14 : vector<1x2x8xf32> to vector<2x8xf32>
    %16 = vector.shape_cast %13 : vector<2x8xf32> to vector<1x2x8xf32>
    tpu.vector_store %arg6[%c0_9, %c0_10, %c0_11], %16 {strides = array<i32>} : memref<3x2x8xf32, #tpu.memory_space<vmem>>, vector<1x2x8xf32>,
    %c1 = arith.constant 1 : index
    %17 = memref.load %arg2[%c1] : memref<3xf32, #tpu.memory_space<smem>>
    %18 = vector.broadcast %17 : f32 to vector<8x128xf32>
    %19 = arith.mulf %3, %18 : vector<8x128xf32>
    %20 = math.exp %19 : vector<8x128xf32>
    %c0_12 = arith.constant 0 : index
    %c1_13 = arith.constant 1 : index
    %c0_14 = arith.constant 0 : index
    %21 = vector.load %arg3[%c0_12, %c1_13, %c0_14] : memref<2x3x128xf32, #tpu.memory_space<vmem>>, vector<2x1x128xf32>
    %22 = vector.shape_cast %21 : vector<2x1x128xf32> to vector<2x128xf32>
    %c1_15 = arith.constant 1 : index
    %c0_16 = arith.constant 0 : index
    %c0_17 = arith.constant 0 : index
    %23 = vector.load %arg6[%c1_15, %c0_16, %c0_17] : memref<3x2x8xf32, #tpu.memory_space<vmem>>, vector<1x2x8xf32>
    %24 = vector.shape_cast %23 : vector<1x2x8xf32> to vector<2x8xf32>
    %cst_18 = arith.constant dense<0.000000e+00> : vector<2x8xf32>
    %25 = tpu.matmul %22, %20, %cst_18 {dimension_numbers = #tpu.dot_dimension_numbers<[1], [1], [0], [0], [0, 0, 1, 0], [], []>} : vector<2x128xf32>, vector<8x128xf32>, vector<2x8xf32> -> vector<2x8xf32>
    %26 = arith.addf %24, %25 : vector<2x8xf32>
    %c1_19 = arith.constant 1 : index
    %c0_20 = arith.constant 0 : index
    %c0_21 = arith.constant 0 : index
    %27 = vector.load %arg6[%c1_19, %c0_20, %c0_21] : memref<3x2x8xf32, #tpu.memory_space<vmem>>, vector<1x2x8xf32>
    %28 = vector.shape_cast %27 : vector<1x2x8xf32> to vector<2x8xf32>
    %29 = vector.shape_cast %26 : vector<2x8xf32> to vector<1x2x8xf32>
    tpu.vector_store %arg6[%c1_19, %c0_20, %c0_21], %29 {strides = array<i32>} : memref<3x2x8xf32, #tpu.memory_space<vmem>>, vector<1x2x8xf32>,
    %c2 = arith.constant 2 : index
    %30 = memref.load %arg2[%c2] : memref<3xf32, #tpu.memory_space<smem>>
    %31 = vector.broadcast %30 : f32 to vector<8x128xf32>
    %32 = arith.mulf %3, %31 : vector<8x128xf32>
    %33 = math.exp %32 : vector<8x128xf32>
    %c0_22 = arith.constant 0 : index
    %c2_23 = arith.constant 2 : index
    %c0_24 = arith.constant 0 : index
    %34 = vector.load %arg3[%c0_22, %c2_23, %c0_24] : memref<2x3x128xf32, #tpu.memory_space<vmem>>, vector<2x1x128xf32>
    %35 = vector.shape_cast %34 : vector<2x1x128xf32> to vector<2x128xf32>
    %c2_25 = arith.constant 2 : index
    %c0_26 = arith.constant 0 : index
    %c0_27 = arith.constant 0 : index
    %36 = vector.load %arg6[%c2_25, %c0_26, %c0_27] : memref<3x2x8xf32, #tpu.memory_space<vmem>>, vector<1x2x8xf32>
    %37 = vector.shape_cast %36 : vector<1x2x8xf32> to vector<2x8xf32>
    %cst_28 = arith.constant dense<0.000000e+00> : vector<2x8xf32>
    %38 = tpu.matmul %35, %33, %cst_28 {dimension_numbers = #tpu.dot_dimension_numbers<[1], [1], [0], [0], [0, 0, 1, 0], [], []>} : vector<2x128xf32>, vector<8x128xf32>, vector<2x8xf32> -> vector<2x8xf32>
    %39 = arith.addf %37, %38 : vector<2x8xf32>
    %c2_29 = arith.constant 2 : index
    %c0_30 = arith.constant 0 : index
    %c0_31 = arith.constant 0 : index
    %40 = vector.load %arg6[%c2_29, %c0_30, %c0_31] : memref<3x2x8xf32, #tpu.memory_space<vmem>>, vector<1x2x8xf32>
    %41 = vector.shape_cast %40 : vector<1x2x8xf32> to vector<2x8xf32>
    %42 = vector.shape_cast %39 : vector<2x8xf32> to vector<1x2x8xf32>
    tpu.vector_store %arg6[%c2_29, %c0_30, %c0_31], %42 {strides = array<i32>} : memref<3x2x8xf32, #tpu.memory_space<vmem>>, vector<1x2x8xf32>,
    %c1_i32 = arith.constant 1 : i32
    %43 = arith.cmpi eq, %arg1, %c1_i32 : i32
    %44 = arith.extui %43 : i1 to i32
    %c0_i32_32 = arith.constant 0 : i32
    %45 = arith.cmpi ne, %44, %c0_i32_32 : i32
    scf.if %45 {
      %c0_33 = arith.constant 0 : index
      %c0_34 = arith.constant 0 : index
      %c0_35 = arith.constant 0 : index
      %46 = vector.load %arg6[%c0_33, %c0_34, %c0_35] : memref<3x2x8xf32, #tpu.memory_space<vmem>>, vector<3x2x8xf32>
      %c0_36 = arith.constant 0 : index
      %c0_37 = arith.constant 0 : index
      %c0_38 = arith.constant 0 : index
      %47 = vector.load %arg5[%c0_36, %c0_37, %c0_38] : memref<3x2x8xf32, #tpu.memory_space<vmem>>, vector<3x2x8xf32>
      tpu.vector_store %arg5[%c0_36, %c0_37, %c0_38], %46 {strides = array<i32>} : memref<3x2x8xf32, #tpu.memory_space<vmem>>, vector<3x2x8xf32>,
    } else {
    }
    return
  }
  func.func @transform_0(%arg0: i32, %arg1: i32) -> i32 {
    %c0_i32 = arith.constant 0 : i32
    %c0_i32_0 = arith.constant 0 : i32
    return %c0_i32 : i32
  }
  func.func @transform_1(%arg0: i32, %arg1: i32) -> (i32, i32, i32) {
    %c0_i32 = arith.constant 0 : i32
    %c0_i32_0 = arith.constant 0 : i32
    %c0_i32_1 = arith.constant 0 : i32
    return %c0_i32, %c0_i32_0, %arg1 : i32, i32, i32
  }
  func.func @transform_2(%arg0: i32, %arg1: i32) -> (i32, i32) {
    %c0_i32 = arith.constant 0 : i32
    return %arg0, %arg1 : i32, i32
  }
  func.func @transform_3(%arg0: i32, %arg1: i32) -> (i32, i32, i32) {
    %c0_i32 = arith.constant 0 : i32
    %c0_i32_0 = arith.constant 0 : i32
    %c0_i32_1 = arith.constant 0 : i32
    return %c0_i32, %c0_i32_0, %arg0 : i32, i32, i32
  }
}

</mosaic_0001>

<bundles_post_ra>
// kernel: tpu_custom_call.1
= control target key start
LH: loop header
LB: loop body
LE: loop exit
PB: predicated region body
PF: predicated region fallthrough
CT: control target
= control target key end

     0   :  { %8 = vsyncpa [#allocation5], 0  ;;  %s811_s0 = inlined_call_operand.vmem [shape: f32[3], index: 0, kind: input, shape index: {}]   ;;  %s812_s1 = inlined_call_operand.vmem [shape: f32[2,3,256], index: 1, kind: input, shape index: {}]   ;;  %s813_s2 = inlined_call_operand.vmem [shape: f32[8,256], index: 2, kind: input, shape index: {}]   ;;  %s814_s3 = inlined_call_operand.hbm [shape: f32[3,2,8], index: 3, kind: output, shape index: {}]  }
   0x1   :  { %9 = vsyncpa [#allocation4], 0  ;;  %s694_s12 = smov 0   ;;  %s696_s13 = smov 0  }
   0x2   :  { %s698_s14 = smov 0   ;;  %s700_s15 = smov 0  }
   0x3   :  { %s702_s16 = smov 0  }
   0x4 LB: > { %s493_s17 = sadd.s32 4294967295, %s667_s16   ;;  %s24_s18 = sadd.s32 1, %s663_s15  ;;  %s667_s16 = sphi %s702_s16, %s15_s16   ;;  %s663_s15 = sphi %s700_s15, %s821_s15   ;;  %s659_s14 = sphi %s698_s14, %s820_s14   ;;  %s655_s13 = sphi %s696_s13, %s819_s13   ;;  %s651_s12 = sphi %s694_s12, %s818_s12  }
   0x5   : > { %p25_p0 = scmp.ge.s32.totalorder %s24_s18, 2  ;;  %s55_s19 = sadd.s32 1, %s655_s13 }
   0x6   : > { %p62_p1 = scmp.ne.s32.totalorder %s655_s13, %s651_s12  ;;  %p63_p2 = scmp.eq.s32.totalorder %s667_s16, 0 }
   0x7   : > { %s823_s18 = smov (%p25_p0, %s24_s18), 0  ;;  %p494_p4 = scmp.ge.s32.totalorder %s667_s16, 1 }
   0x8   : > { %p727_p3 = por %p63_p2, %p62_p1  ;;  %s52_s21 = ssub.s32 %s663_s15, %s823_s18 }
   0x9   : > { %p133_p5 = scmp.lt.s32.totalorder %s667_s16, 3  ;;  %p53_p6 = scmp.eq.s32.totalorder %s52_s21, 0 }
   0xa   : > { %p741_p8 = scmp.eq.s32.totalorder %s493_s17, 0  ;;  %s145_s27 = sshll.u32 %s811_s0, 4  ;;  %s146_s27 = int_to_ptr.vmem [resolvable:$true] %s145_s27 }
   0xb   : > { %p735_p7 = pnand %p494_p4, %p133_p5  ;;  %s669_s28 = smov [#allocation3]  }
   0xc   : > { %s746_s24 = scalar_select %p53_p6, %s655_s13, %s55_s19  }
   0xd   : > { %p519_p9 = pneg %p735_p7  ;;  %p496_p11 = scmp.ge.s32.totalorder %s667_s16, 2 }
   0xf   : > { %p520_p10 = pnand %p741_p8, %p519_p9  ;;  %152 = sbr.rel (%p496_p11) target bundleno = 26 (0x1a), region = 20 }
  0x11   : > { %522 = dma.vmem_to_smem (!%p520_p10), %s146_s27, 16, %s669_s28, [#allocation5]  }
  0x14   : > { %155 = sbr.rel (!%p727_p3) target bundleno = 26 (0x1a), region = 24  ;;  %s157_s29 = sand.u32 (%p727_p3), 1, %s655_s13  }
  0x15   : > { %s498_s30 = sshll.u32 (%p727_p3), %s663_s15, 2  ;;  %s497_s4 = sshll.u32 (%p727_p3), %s157_s29, 3 }
  0x16   : > { %s161_s7 = scalar_lea.vmem (%p727_p3), %s812_s1, %s498_s30  ;;  %s159_s8 = scalar_lea.vmem (%p727_p3), [#allocation6], %s497_s4 }
  0x17   : > { %v178_v0 = vld [vmem:[%s161_s7] sm:$0xf] (%p727_p3)  ;;  %v180_v1 = vld [vmem:[%s161_s7 + $0x8] sm:$0xf] (%p727_p3) }
  0x18   : > { %179 = vst [vmem:[%s159_s8] sm:$0xf] (%p727_p3), %v178_v0 }
  0x19   : > { %181 = vst [vmem:[%s159_s8 + $0x4] sm:$0xf] %v180_v1 }
  0x1a PF: > { %223 = sbr.rel (%p735_p7) target bundleno = 218 (0xda), region = 69 }
  0x1f   : > { %642 = dma.done.wait (%p741_p8), [#allocation5], 16  }
  0x20   : > { %644 = vsyncadd (%p741_p8), [#allocation5], 4294967280  ;;  %s231_s9 = sand.u32 1, %s651_s12  }
  0x21   : > { %s501_s10 = sshll.u32 %s231_s9, 3 }
  0x22   : > { %s770_s11 = scalar_lea.vmem [#allocation6], %s501_s10 }
  0x23   : > { %237 = sfence }
  0x24   : > { %p260_p12 = scmp.lt.s32.totalorder %s659_s14, 1  ;;  %p503_p13 = scmp.ne.s32.totalorder %s659_s14, 0 }
  0x26   : > { %s261_s19 = scalar_select %p260_p12, %s659_s14, 1 }
  0x27   : > { %269 = sbr.rel (%p503_p13) target bundleno = 48 (0x30), region = 81 }
  0x28   : > { %s502_s20 = sshll.u32 %s261_s19, 3 }
  0x29   : > { %s265_s25 = scalar_lea.vmem %s813_s2, %s502_s20 }
  0x2c   : > { %vm270_vm0 = vcmask 58368   ;;  %v670_v2 = vmov 0.0  }
  0x2d   : > { %271 = vst.msk [vmem:[#allocation2] sm:$0x3] %vm270_vm0, %v670_v2 }
  0x2e   : > { %272 = vst.msk [vmem:[#allocation2 + $0x2] sm:$0x3] %vm270_vm0, %v670_v2 }
  0x2f   : > { %273 = vst.msk [vmem:[#allocation2 + $0x4] sm:$0x3] %vm270_vm0, %v670_v2 }
  0x30 PF: > { %s505_s12 = sld [smem:[#allocation3 + $0x2]]  ;;  %v274_v3 = vld [vmem:[%s265_s25] sm:$0xff]  ;;  %v354_v12 = vld [vmem:[%s770_s11 + $0x6] sm:$0x1]  ;;  %v281_v14 = vld [vmem:[%s770_s11 + $0x4] sm:$0x1] }
  0x31   : > { %s275_s23 = sld [smem:[#allocation3]]  ;;  %v318_v15 = vld [vmem:[%s770_s11 + $0x5] sm:$0x1]  ;;  %v359_v16 = vrot.slane %v354_v12, 7  ;;  %vm286_vm1 = vcmask 1041409   ;;  %v285_v18 = vrot.slane %v281_v14, 7 }
  0x32   : > { %s504_s26 = sld [smem:[#allocation3 + $0x1]]  ;;  %v353_v17 = vld [vmem:[%s770_s11 + $0x2] sm:$0x1]  ;;  %v280_v19 = vld [vmem:[%s770_s11] sm:$0x1]  ;;  %v323_v20 = vrot.slane %v318_v15, 7 }
  0x33   : > { %v317_v22 = vld [vmem:[%s770_s11 + $0x1] sm:$0x1]  ;;  %v360_v24 = vsel %vm286_vm1, %v359_v16, %v353_v17  ;;  %v287_v26 = vsel %vm286_vm1, %v285_v18, %v280_v19  ;;  %vm310_vm2 = vcmask 58368   ;;  %p506_p0 = scmp.ne.s32.totalorder %s659_s14, 1 }
  0x34   : > { %v324_v27 = vsel %vm286_vm1, %v323_v20, %v317_v22  ;;  %v282_v28 = vld [vmem:[#allocation2] sm:$0x3] }
  0x35   : > { %v320_v29 = vld [vmem:[#allocation2 + $0x2] sm:$0x3] }
  0x36   : > { %v349_v4 = vstv %s505_s12  ;;  %v356_v34 = vld [vmem:[#allocation2 + $0x4] sm:$0x3] }
  0x37   : > { %v350_v5 = vmul.f32 %v349_v4, %v274_v3  ;;  %v276_v6 = vstv %s275_s23 }
  0x38   : > { %v277_v7 = vmul.f32 %v276_v6, %v274_v3  ;;  %v313_v8 = vstv %s504_s26 }
  0x39   : > { %v351_v9 = vmul.f32 1.442695, %v350_v5  ;;  %v314_v10 = vmul.f32 %v313_v8, %v274_v3 }
  0x3a   : > { %v278_v11 = vmul.f32 1.442695, %v277_v7 }
  0x3b   : > { %572 = vpow2.f32 %v351_v9  ;;  %v315_v13 = vmul.f32 1.442695, %v314_v10 }
  0x3c   : > { %574 = vpow2.f32 %v278_v11 }
  0x3d   : > { %576 = vpow2.f32 %v315_v13 }
  0x41   : > { %v573_v21 = vpop.eup %572 }
  0x42   : > { %v575_v23 = vpop.eup %574  ;;  %377 = vmatpush.xpose.msra.mxu2 %v573_v21 }
  0x43   : > { %v577_v25 = vpop.eup %576  ;;  %304 = vmatpush.xpose.msra.mxu0 %v575_v23 }
  0x44   : > { %341 = vmatpush.xpose.msra.mxu1 %v577_v25 }
  0x45   : > { %378 = vmatmul.f32.vlgmr.msra.gmra.mxu2 %v360_v24 }
  0x46   : > { %305 = vmatmul.f32.vlgmr.msra.gmra.mxu0 %v287_v26 }
  0x47   : > { %342 = vmatmul.f32.vlgmr.msra.gmra.mxu1 %v324_v27 }
  0xc3   : > { %v306_v30 = vpop.f32.mrf.mxu0 }
  0xc4   : > { %v309_v31 = vadd.f32 %v306_v30, %v282_v28  ;;  %v343_v32 = vpop.f32.mrf.mxu1 }
  0xc5   : > { %v346_v33 = vadd.f32 %v343_v32, %v320_v29 }
  0xc6   : > { %311 = vst.msk [vmem:[#allocation2] sm:$0x3] %vm310_vm2, %v309_v31 }
  0xc7   : > { %347 = vst.msk [vmem:[#allocation2 + $0x2] sm:$0x3] %vm310_vm2, %v346_v33  ;;  %387 = sbr.rel (%p506_p0) target bundleno = 212 (0xd4), region = 85 }
  0xc8   : > { %v379_v35 = vpop.f32.mrf.mxu2 }
  0xc9   : > { %v382_v36 = vadd.f32 %v379_v35, %v356_v34 }
  0xcb   : > { %383 = vst.msk [vmem:[#allocation2 + $0x4] sm:$0x3] %vm310_vm2, %v382_v36 }
  0xcd   : > { %v388_v37 = vld [vmem:[#allocation2] sm:$0x3] }
  0xce   : > { %v389_v38 = vld [vmem:[#allocation2 + $0x2] sm:$0x3]  ;;  %391 = vst.msk [vmem:[#allocation7] sm:$0x3] %vm310_vm2, %v388_v37 }
  0xcf   : > { %392 = vst.msk [vmem:[#allocation7 + $0x2] sm:$0x3] %vm310_vm2, %v389_v38 }
  0xd2   : > { %v390_v39 = vld [vmem:[#allocation2 + $0x4] sm:$0x3] }
  0xd3   : > { %393 = vst.msk [vmem:[#allocation7 + $0x4] sm:$0x3] %vm310_vm2, %v390_v39 }
  0xd4 PF: > { %p525_p1 = scmp.eq.s32.totalorder %s493_s17, 1  ;;  %s403_s29 = sshll.u32 %s814_s3, 4  ;;  %s404_s29 = int_to_ptr.hbm [resolvable:$true] %s403_s29 }
  0xd5   : > { %s671_s30 = smov [#allocation7]   ;;  %s672_s4 = smov 32  }
  0xd6   : > { %s401_s14 = sshll.u32 %s671_s30, 4  ;;  %s673_s5 = smov 2   ;;  %s402_s14 = int_to_ptr.vmem [resolvable:$true] %s401_s14 }
  0xd7   : > { %516 = dma.vmem_to_hbm [thread:$0]  (%p525_p1), %s402_s14, 96, %s404_s29, [#allocation4], %s672_s4, %s672_s4, %s673_s5  }
  0xd8   : > { %646 = dma.done.wait (%p525_p1), [#allocation4], 96  }
  0xd9   : > { %648 = vsyncadd (%p525_p1), [#allocation4], 4294967200 }
  0xda PF: > { %s15_s16 = sadd.s32 1, %s667_s16   ;;  %s818_s12 = smov %s655_s13 }
  0xdb   : > { %p12_p2 = scmp.ge.s32.totalorder %s15_s16, 4   ;;  %s819_s13 = smov %s746_s24 }
  0xdc   : > { %s820_s14 = smov %s663_s15  ;;  %s821_s15 = smov %s823_s18 }
  0xdd   :  { %14 = sbr.rel (!%p12_p2) target bundleno = 4 (0x4), region = 124 }
  0xe2   :  { %420 = vsyncpa [#allocation4], 1 }
  0xe3   :  { %422 = vsyncpa [#allocation4 + $0x1], 1 }
  0xe4   :  { %423 = vsyncpa [#allocation5], 1 }
  0xe5   :  { %425 = vsyncpa [#allocation5 + $0x1], 1 }

</bundles_post_ra>
